<compile_context>
chip_gen: v7x
topology: tpu7x:2x2x1
jax: 0.10.0
libtpu: 0.0.40
codegen_flags: <defaults>
</compile_context>

<pallas_src>
import jax
import jax.numpy as jnp
from jax.experimental import pallas as pl
from jax.experimental.pallas import tpu as pltpu

# 1024 rows * 768 * 4 B = 3 MiB per tile; x2 (in+out) x2 (double buffer) = 12 MiB
# -> safe under the 16 MiB (v5e) / 32 MiB (v6e, v7x) default scoped-VMEM limits.
MAX_TILE_ROWS = 1024


def identity_copy_kernel(x_ref, o_ref):
    # Whole forward is identity -> pure VMEM tile copy.
    o_ref[...] = x_ref[...]


def _pick_tile_rows(rows):
    """Largest divisor of `rows` that is <= MAX_TILE_ROWS (big, aligned tiles)."""
    tile = min(rows, MAX_TILE_ROWS)
    while rows % tile:
        tile -= 1
    return tile


def dummy_transformer_block(x):
    """Pallas equivalent of DummyTransformerBlock.forward (identity)."""
    B, T, C = x.shape
    rows = B * T
    x2d = x.reshape(rows, C)            # contiguous reshape: free in XLA
    tile_rows = _pick_tile_rows(rows)
    grid = (rows // tile_rows,)

    y2d = pl.pallas_call(
        identity_copy_kernel,
        out_shape=jax.ShapeDtypeStruct((rows, C), x.dtype),
        grid=grid,
        in_specs=[pl.BlockSpec((tile_rows, C), lambda i: (i, 0))],
        out_specs=pl.BlockSpec((tile_rows, C), lambda i: (i, 0)),
        # Output aliases the input buffer: no extra HBM traffic when donated.
        input_output_aliases={0: 0},
        compiler_params=pltpu.CompilerParams(
            # Row-tile axis is independent -> shard across TCs on v7x megacore.
            dimension_semantics=("parallel",),
        ),
    )(x2d)

    return y2d.reshape(B, T, C)


if __name__ == "__main__":
    # DummyTransformerBlock has no parameters; only the input matters.
    key = jax.random.PRNGKey(0)
    x = jax.random.uniform(key, (2, 4, 768), dtype=jnp.float32)

    y = dummy_transformer_block(x)
    jax.block_until_ready(y)

    assert y.shape == x.shape and y.dtype == x.dtype
    assert bool(jnp.array_equal(y, x))
    print("KERNEL_OK")
</pallas_src>

<mosaic_0001>
module attributes {stable_mosaic.version = 11 : i64} {
  func.func @identity_copy_kernel(%arg0: i32, %arg1: memref<8x768xf32, #tpu.memory_space<vmem>>, %arg2: memref<8x768xf32, #tpu.memory_space<vmem>>) attributes {dimension_semantics = [#tpu.dimension_semantics<parallel>], iteration_bounds = array<i64: 1>, scalar_prefetch = 0 : i64, scratch_operands = 0 : i64, tpu.core_type = #tpu.core_type<tc>, window_params = [{transform_indices = @transform_0, window_bounds = array<i64: 8, 768>}, {transform_indices = @transform_1, window_bounds = array<i64: 8, 768>}]} {
    %c0 = arith.constant 0 : index
    %c0_0 = arith.constant 0 : index
    %0 = vector.load %arg1[%c0, %c0_0] : memref<8x768xf32, #tpu.memory_space<vmem>>, vector<8x768xf32>
    %c0_1 = arith.constant 0 : index
    %c0_2 = arith.constant 0 : index
    %1 = vector.load %arg2[%c0_1, %c0_2] : memref<8x768xf32, #tpu.memory_space<vmem>>, vector<8x768xf32>
    tpu.vector_store %arg2[%c0_1, %c0_2], %0 {strides = array<i32>} : memref<8x768xf32, #tpu.memory_space<vmem>>, vector<8x768xf32>,
    return
  }
  func.func @transform_0(%arg0: i32) -> (i32, i32) {
    %c0_i32 = arith.constant 0 : i32
    %c0_i32_0 = arith.constant 0 : i32
    return %arg0, %c0_i32 : i32, i32
  }
  func.func @transform_1(%arg0: i32) -> (i32, i32) {
    %c0_i32 = arith.constant 0 : i32
    %c0_i32_0 = arith.constant 0 : i32
    return %arg0, %c0_i32 : i32, i32
  }
}

</mosaic_0001>

<bundles_post_ra>
// kernel: tpu_custom_call.1
= control target key start
LH: loop header
LB: loop body
LE: loop exit
PB: predicated region body
PF: predicated region fallthrough
CT: control target
= control target key end

     0   :  { %6 = vsyncpa [#allocation3], 0  ;;  %s134_s0 = inlined_call_operand.hbm [shape: f32[8,768], index: 0, kind: input, shape index: {}, may-alias: {0,1}]   ;;  %s135_s1 = inlined_call_operand.hbm [shape: f32[8,768], index: 1, kind: output, shape index: {}, may-alias: {0,1}]  }
   0x1   :  { %7 = vsyncpa [#allocation4], 0  ;;  %s98_s6 = smov [#allocation2]   ;;  %s50_s10 = scalar_lea.hbm %s134_s0, 768 }
   0x2   :  { %s14_s7 = sshll.u32 %s98_s6, 4  ;;  %p51_p0 = scmp.ne.s32.totalorder %s134_s0, %s50_s10  ;;  %s15_s7 = int_to_ptr.vmem [resolvable:$true] %s14_s7 }
   0x3   :  { %p54_p1 = scmp.lt.u32.totalorder %s50_s10, %s134_s0 }
   0x5   :  { %p56_p2 = pnand %p54_p1, %p51_p0 }
   0x7   :  { %59 = shalt.err (!%p56_p2)
}
   0x8   :  { %s60_s15 = scalar_lea.vmem %s15_s7, 768  ;;  %p65_p4 = scmp.lt.s32.totalorder %s15_s7, %s15_s7 }
   0x9   :  { %p61_p3 = scmp.ne.s32.totalorder %s15_s7, %s60_s15  ;;  %p66_p5 = scmp.lt.s32.totalorder %s60_s15, %s60_s15 }
   0xb   :  { %p67_p6 = por %p66_p5, %p65_p4 }
   0xd   :  { %p68_p7 = pnand %p67_p6, %p61_p3 }
   0xf   :  { %71 = shalt.err (!%p68_p7)
}
  0x10   :  { %17 = dma.hbm_to_vmem [thread:$0]  %s134_s0, 768, %s15_s7, [#allocation3]  }
  0x11   :  { %94 = dma.done.wait [#allocation3], 768  }
  0x12   :  { %95 = vsyncadd [#allocation3], 4294966528  ;;  %s99_s18 = smov [#allocation5]   ;;  %v21_v0 = vld [vmem:[#allocation2] sm:$0xff]  ;;  %v22_v1 = vld [vmem:[#allocation2 + $0x8] sm:$0xff] }
  0x13   :  { %s39_s19 = sshll.u32 %s99_s18, 4  ;;  %v23_v2 = vld [vmem:[#allocation2 + $0x10] sm:$0xff]  ;;  %27 = vst [vmem:[#allocation5] sm:$0xff] %v21_v0  ;;  %28 = vst [vmem:[#allocation5 + $0x8] sm:$0xff] %v22_v1  ;;  %v24_v3 = vld [vmem:[#allocation2 + $0x18] sm:$0xff]  ;;  %s40_s19 = int_to_ptr.vmem [resolvable:$true] %s39_s19 }
  0x14   :  { %29 = vst [vmem:[#allocation5 + $0x10] sm:$0xff] %v23_v2  ;;  %v25_v4 = vld [vmem:[#allocation2 + $0x20] sm:$0xff]  ;;  %v26_v5 = vld [vmem:[#allocation2 + $0x28] sm:$0xff]  ;;  %30 = vst [vmem:[#allocation5 + $0x18] sm:$0xff] %v24_v3  ;;  %s72_s20 = scalar_lea.vmem %s40_s19, 768  ;;  %p77_p9 = scmp.lt.s32.totalorder %s40_s19, %s40_s19 }
  0x15   :  { %31 = vst [vmem:[#allocation5 + $0x20] sm:$0xff] %v25_v4  ;;  %32 = vst [vmem:[#allocation5 + $0x28] sm:$0xff] %v26_v5  ;;  %p73_p8 = scmp.ne.s32.totalorder %s40_s19, %s72_s20  ;;  %p78_p10 = scmp.lt.s32.totalorder %s72_s20, %s72_s20 }
  0x17   :  { %p79_p11 = por %p78_p10, %p77_p9 }
  0x19   :  { %p80_p12 = pnand %p79_p11, %p73_p8 }
  0x1b   :  { %83 = shalt.err (!%p80_p12)
}
  0x1c   :  { %s84_s22 = scalar_lea.hbm %s135_s1, 768 }
  0x1d   :  { %p85_p13 = scmp.ne.s32.totalorder %s135_s1, %s84_s22  ;;  %p88_p0 = scmp.lt.u32.totalorder %s84_s22, %s135_s1 }
  0x1f   :  { %p90_p1 = pnand %p88_p0, %p85_p13 }
  0x21   :  { %93 = shalt.err (!%p90_p1)
}
  0x22   :  { %42 = dma.vmem_to_hbm [thread:$0]  %s40_s19, 768, %s135_s1, [#allocation4]  }
  0x23   :  { %96 = dma.done.wait [#allocation4], 768  }
  0x24   :  { %97 = vsyncadd [#allocation4], 4294966528 }
  0x25   :  { %46 = vsyncpa [#allocation3], 1 }
  0x26   :  { %47 = vsyncpa [#allocation4], 1 }

</bundles_post_ra>
